<compile_context>
chip_gen: v7x
topology: tpu7x:2x2x1
jax: 0.10.0
libtpu: 0.0.40
codegen_flags: <defaults>
</compile_context>

<pallas_src>
import functools

import jax
import jax.numpy as jnp
from jax import lax
from jax.experimental import pallas as pl
from jax.experimental.pallas import tpu as pltpu


def _round_up(x: int, m: int) -> int:
    return (x + m - 1) // m * m


# ----------------------------------------------------------------------------
# Generation-aware constants (computed once at import).
# ----------------------------------------------------------------------------
def _tpu_vmem_capacity() -> int:
    try:
        return int(pltpu.get_tpu_info().vmem_capacity_bytes)
    except Exception:
        return 64 << 20  # conservative (v7x-sized) fallback


def _feature_align() -> int:
    # v6e/v7x MXUs are 2x256^2 -> prefer 256-wide lane groups for small feature
    # dims; v2..v5 (128-wide MXU tiles) keep 128 to avoid wasted FLOPs/VMEM.
    try:
        kind = jax.devices()[0].device_kind.lower()
    except Exception:
        return 256
    if any(tag in kind for tag in ("v2", "v3", "v4", "v5")):
        return 128
    return 256


_VMEM_CAP = _tpu_vmem_capacity()
_VMEM_BUDGET = min((_VMEM_CAP * 3) // 4, 96 << 20)  # leave runtime headroom
_FEATURE_ALIGN = _feature_align()


# ----------------------------------------------------------------------------
# Kernel
# ----------------------------------------------------------------------------
def two_layer_kernel(x_ref, w1_ref, b1_ref, w2_ref, b2_ref, y_ref, acc_ref):
    k = pl.program_id(1)  # hidden-dim (reduction) axis, innermost

    @pl.when(k == 0)
    def _init():
        acc_ref[...] = jnp.zeros_like(acc_ref)

    x = x_ref[...]                                  # [tn, D_in]   (bf16)
    # Layer 1 for this H-tile: plain [M,K]x[K,N] contraction (pre-transposed
    # weights), f32 MXU accumulation, bias + ReLU in f32.
    h = jnp.dot(x, w1_ref[...], preferred_element_type=jnp.float32) + b1_ref[...]
    h_relu = jnp.maximum(h, 0.0)
    # Layer 2 contribution of this H-tile, accumulated in f32.
    acc_ref[...] += jnp.dot(h_relu.astype(x.dtype), w2_ref[...],
                            preferred_element_type=jnp.float32)

    @pl.when(k == pl.num_programs(1) - 1)
    def _finalize():
        y_ref[...] = (acc_ref[...] + b2_ref[...]).astype(y_ref.dtype)


# ----------------------------------------------------------------------------
# One-time parameter preparation (hoisted out of the per-call forward path).
# ----------------------------------------------------------------------------
def prepare_params(w1, b1, w2, b2, compute_dtype=jnp.bfloat16):
    """w1: [H, D_in]; b1: [H]; w2: [D_out, H]; b2: [D_out].

    Returns (params, meta): padded, pre-transposed, pre-cast weights plus the
    static hidden-tile size `th` and the true output width `d_out`.
    """
    H, D_in = w1.shape
    D_out, H2 = w2.shape
    assert H2 == H
    align = _FEATURE_ALIGN
    c_sz = jnp.dtype(compute_dtype).itemsize

    H_p = _round_up(H, align)
    D_out_p = _round_up(D_out, align)

    # Hidden-dim tiling decision: keep both weights fully VMEM-resident when
    # they fit comfortably; otherwise stream H-tiles (double-buffered).
    weight_bytes = (D_in * H_p + H_p * D_out_p) * c_sz
    if weight_bytes <= _VMEM_BUDGET // 2:
        th = H_p
    else:
        per_col = 2 * (D_in + D_out_p) * c_sz          # double-buffered bytes / H column
        th = max(align, (_VMEM_BUDGET // 2) // per_col // align * align)
        th = min(th, H_p)
        H_p = _round_up(H_p, th)                        # make th divide H_p exactly

    # Zero padding is exact (padded rows/cols contribute 0; relu(0)=0) and the
    # padded outputs are sliced off in the forward pass.
    w1t = jnp.pad(w1.T, ((0, 0), (0, H_p - H))).astype(compute_dtype)               # [D_in, H_p]
    w2t = jnp.pad(w2.T, ((0, H_p - H), (0, D_out_p - D_out))).astype(compute_dtype)  # [H_p, D_out_p]
    b1p = jnp.pad(b1, (0, H_p - H)).reshape(1, H_p).astype(jnp.float32)
    b2p = jnp.pad(b2, (0, D_out_p - D_out)).reshape(1, D_out_p).astype(jnp.float32)
    return (w1t, b1p, w2t, b2p), {"d_out": int(D_out), "th": int(th)}


# ----------------------------------------------------------------------------
# Forward pass
# ----------------------------------------------------------------------------
@functools.partial(
    jax.jit,
    static_argnames=("d_out", "th", "compute_dtype", "tile_n", "single_buffer_weights"),
)
def two_layer_net_apply(x, w1t, b1p, w2t, b2p, *, d_out, th,
                        compute_dtype=jnp.bfloat16, tile_n=None,
                        single_buffer_weights=True):
    """x: [N, D_in]; w1t: [D_in, H_p]; b1p: [1, H_p]; w2t: [H_p, D_out_p]; b2p: [1, D_out_p]."""
    N, D_in = x.shape
    H_p = w1t.shape[1]
    D_out_p = w2t.shape[1]
    out_dtype = x.dtype
    c_sz = jnp.dtype(compute_dtype).itemsize
    o_sz = jnp.dtype(out_dtype).itemsize

    assert H_p % th == 0, "hidden tile must divide padded hidden dim"
    num_h = H_p // th
    resident = num_h == 1

    # ---- VMEM accounting -> batch tile selection ---------------------------
    w_bufs = 1 if (resident and single_buffer_weights) else 2
    w_vmem = w_bufs * (D_in * th + th * D_out_p) * c_sz
    bias_vmem = 2 * (th + D_out_p) * 4
    per_row = (2 * D_in * c_sz        # streamed x tile (double-buffered)
               + 2 * D_out_p * o_sz   # streamed y tile (double-buffered)
               + D_out_p * 4          # f32 accumulator scratch
               + th * 4)              # in-flight f32 hidden tile
    avail = _VMEM_BUDGET - w_vmem - bias_vmem - (2 << 20)
    tn_max = max(16, avail // per_row // 16 * 16)

    target = tile_n if tile_n is not None else (1024 if _VMEM_BUDGET >= (64 << 20) else 512)
    tn = min(target, tn_max)
    if N >= 32:
        # >= 2 batch steps so the "parallel" axis can shard across v7x's 2 TCs.
        tn = min(tn, _round_up((N + 1) // 2, 16))
    tn = max(16, min(tn, _round_up(N, 16)))
    N_p = _round_up(N, tn)
    n_bt = N_p // tn

    xd = x.astype(compute_dtype)
    if N_p != N:
        xd = jnp.pad(xd, ((0, N_p - N), (0, 0)))

    # ---- BlockSpecs ---------------------------------------------------------
    w_mode = pl.Buffered(1) if (resident and single_buffer_weights) else None
    b2_mode = pl.Buffered(1) if single_buffer_weights else None

    def _spec(shape, imap, mode=None):
        if mode is None:
            return pl.BlockSpec(shape, imap)
        return pl.BlockSpec(shape, imap, pipeline_mode=mode)

    in_specs = [
        _spec((tn, D_in), lambda i, k: (i, 0)),             # x: streamed over batch
        _spec((D_in, th), lambda i, k: (0, k), w_mode),      # W1^T tile (resident if num_h==1)
        _spec((1, th), lambda i, k: (0, k), w_mode),         # b1 tile
        _spec((th, D_out_p), lambda i, k: (k, 0), w_mode),   # W2^T tile
        _spec((1, D_out_p), lambda i, k: (0, 0), b2_mode),   # b2: resident
    ]
    out_spec = pl.BlockSpec((tn, D_out_p), lambda i, k: (i, 0))

    # ---- compiler params / cost ---------------------------------------------
    vmem_needed = int(w_vmem + bias_vmem + tn * per_row + (2 << 20))
    cp_kwargs = dict(dimension_semantics=("parallel", "arbitrary"))
    if vmem_needed > (16 << 20):
        cp_kwargs["vmem_limit_bytes"] = int(min(vmem_needed, _VMEM_CAP - (8 << 20)))

    cost = pl.CostEstimate(
        flops=2 * N_p * (D_in * H_p + H_p * D_out_p),
        transcendentals=0,
        bytes_accessed=int(
            N_p * D_in * c_sz
            + (D_in * H_p + H_p * D_out_p) * c_sz * (1 if resident else n_bt)
            + (H_p + D_out_p) * 4
            + N_p * D_out_p * o_sz),
    )

    y_padded = pl.pallas_call(
        two_layer_kernel,
        out_shape=jax.ShapeDtypeStruct((N_p, D_out_p), out_dtype),
        grid_spec=pltpu.PrefetchScalarGridSpec(
            num_scalar_prefetch=0,
            grid=(n_bt, num_h),
            in_specs=in_specs,
            out_specs=out_spec,
            scratch_shapes=[pltpu.VMEM((tn, D_out_p), jnp.float32)],
        ),
        compiler_params=pltpu.CompilerParams(**cp_kwargs),
        cost_estimate=cost,
    )(xd, w1t, b1p, w2t, b2p)

    return y_padded[:N, :d_out]


def two_layer_net(x, params, meta, **kwargs):
    """Forward with pre-formatted params (from prepare_params).

    Tries single-buffered resident weights (pl.Buffered(1)) first; if this
    jax/libtpu build rejects that pipeline mode, falls back to the default
    double-buffered BlockSpecs (identical numerics).
    """
    try:
        y = two_layer_net_apply(x, *params, d_out=meta["d_out"], th=meta["th"],
                                single_buffer_weights=True, **kwargs)
        jax.block_until_ready(y)
        return y
    except Exception:
        return two_layer_net_apply(x, *params, d_out=meta["d_out"], th=meta["th"],
                                   single_buffer_weights=False, **kwargs)


if __name__ == "__main__":
    # Small shapes consistent with the module's forward: x is [N, D_in].
    # NOTE: at these toy sizes the kernel is overhead-dominated; the tiling /
    # bf16 / padding pays off at production shapes (N >= 1024, dims >= 256).
    N, D_in, H, D_out = 16, 64, 32, 8

    key = jax.random.PRNGKey(0)
    kx, kw1, kb1, kw2, kb2 = jax.random.split(key, 5)

    x = jax.random.normal(kx, (N, D_in), dtype=jnp.float32)

    # torch.nn.Linear-style init: U(-1/sqrt(fan_in), 1/sqrt(fan_in)),
    # weight [out, in], bias [out].
    bound1 = 1.0 / (D_in ** 0.5)
    w1 = jax.random.uniform(kw1, (H, D_in), jnp.float32, -bound1, bound1)
    b1 = jax.random.uniform(kb1, (H,), jnp.float32, -bound1, bound1)

    bound2 = 1.0 / (H ** 0.5)
    w2 = jax.random.uniform(kw2, (D_out, H), jnp.float32, -bound2, bound2)
    b2 = jax.random.uniform(kb2, (D_out,), jnp.float32, -bound2, bound2)

    # One-time weight prep (pad + transpose + bf16 cast), hoisted out of forward.
    params, meta = prepare_params(w1, b1, w2, b2)

    y = two_layer_net(x, params, meta)
    jax.block_until_ready(y)
    assert y.shape == (N, D_out)

    # Reference 1: exact kernel semantics (bf16 inputs, f32 accumulation,
    # bf16 re-cast of the hidden activation) -> tight-ish tolerance.
    f32 = jnp.float32
    xb = x.astype(jnp.bfloat16).astype(f32)
    w1b = w1.astype(jnp.bfloat16).astype(f32)
    w2b = w2.astype(jnp.bfloat16).astype(f32)
    h_q = jnp.maximum(
        jnp.dot(xb, w1b.T, precision=lax.Precision.HIGHEST) + b1, 0.0
    ).astype(jnp.bfloat16).astype(f32)
    y_ref_q = jnp.dot(h_q, w2b.T, precision=lax.Precision.HIGHEST) + b2
    assert jnp.allclose(y, y_ref_q, atol=1e-2, rtol=1e-2)

    # Reference 2: true f32 PyTorch forward -> loose tolerance (bf16 compute).
    h_ref = jnp.maximum(
        jnp.dot(x, w1.T, precision=lax.Precision.HIGHEST) + b1, 0.0
    )
    y_ref = jnp.dot(h_ref, w2.T, precision=lax.Precision.HIGHEST) + b2
    assert jnp.allclose(y, y_ref, atol=1e-1, rtol=1e-1)

    print("KERNEL_OK")
</pallas_src>

<mosaic_0001>
module attributes {stable_mosaic.version = 11 : i64} {
  func.func @two_layer_kernel(%arg0: i32, %arg1: i32, %arg2: memref<16x64xbf16, #tpu.memory_space<vmem>>, %arg3: memref<64x256xbf16, #tpu.memory_space<vmem>>, %arg4: memref<1x256xf32, #tpu.memory_space<vmem>>, %arg5: memref<256x256xbf16, #tpu.memory_space<vmem>>, %arg6: memref<1x256xf32, #tpu.memory_space<vmem>>, %arg7: memref<16x256xf32, #tpu.memory_space<vmem>>, %arg8: memref<16x256xf32, #tpu.memory_space<vmem>>) attributes {dimension_semantics = [#tpu.dimension_semantics<parallel>, #tpu.dimension_semantics<arbitrary>], iteration_bounds = array<i64: 1, 1>, scalar_prefetch = 0 : i64, scratch_operands = 1 : i64, tpu.core_type = #tpu.core_type<tc>, window_params = [{transform_indices = @transform_0, window_bounds = array<i64: 16, 64>}, {pipeline_mode = #tpu.pipeline_mode<synchronous>, transform_indices = @transform_1, window_bounds = array<i64: 64, 256>}, {pipeline_mode = #tpu.pipeline_mode<synchronous>, transform_indices = @transform_2, window_bounds = array<i64: 1, 256>}, {pipeline_mode = #tpu.pipeline_mode<synchronous>, transform_indices = @transform_3, window_bounds = array<i64: 256, 256>}, {pipeline_mode = #tpu.pipeline_mode<synchronous>, transform_indices = @transform_4, window_bounds = array<i64: 1, 256>}, {transform_indices = @transform_5, window_bounds = array<i64: 16, 256>}]} {
    %c0_i32 = arith.constant 0 : i32
    %0 = arith.cmpi eq, %arg1, %c0_i32 : i32
    %1 = arith.extui %0 : i1 to i32
    %c0_i32_0 = arith.constant 0 : i32
    %2 = arith.cmpi ne, %1, %c0_i32_0 : i32
    scf.if %2 {
      %cst_16 = arith.constant 0.000000e+00 : f32
      %20 = vector.broadcast %cst_16 : f32 to vector<16x256xf32>
      %c0_17 = arith.constant 0 : index
      %c0_18 = arith.constant 0 : index
      %21 = vector.load %arg8[%c0_17, %c0_18] : memref<16x256xf32, #tpu.memory_space<vmem>>, vector<16x256xf32>
      tpu.vector_store %arg8[%c0_17, %c0_18], %20 {strides = array<i32>} : memref<16x256xf32, #tpu.memory_space<vmem>>, vector<16x256xf32>,
    } else {
    }
    %c0 = arith.constant 0 : index
    %c0_1 = arith.constant 0 : index
    %3 = vector.load %arg2[%c0, %c0_1] : memref<16x64xbf16, #tpu.memory_space<vmem>>, vector<16x64xbf16>
    %c0_2 = arith.constant 0 : index
    %c0_3 = arith.constant 0 : index
    %4 = vector.load %arg3[%c0_2, %c0_3] : memref<64x256xbf16, #tpu.memory_space<vmem>>, vector<64x256xbf16>
    %cst = arith.constant dense<0.000000e+00> : vector<16x256xf32>
    %5 = tpu.matmul %3, %4, %cst {dimension_numbers = #tpu.dot_dimension_numbers<[1], [0], [0], [1], [0, 0, 1, 1], [], []>} : vector<16x64xbf16>, vector<64x256xbf16>, vector<16x256xf32> -> vector<16x256xf32>
    %c0_4 = arith.constant 0 : index
    %c0_5 = arith.constant 0 : index
    %6 = vector.load %arg4[%c0_4, %c0_5] : memref<1x256xf32, #tpu.memory_space<vmem>>, vector<1x256xf32>
    %7 = vector.broadcast %6 : vector<1x256xf32> to vector<16x256xf32>
    %8 = arith.addf %5, %7 : vector<16x256xf32>
    %cst_6 = arith.constant 0.000000e+00 : f32
    %9 = vector.broadcast %cst_6 : f32 to vector<16x256xf32>
    %10 = arith.maximumf %8, %9 : vector<16x256xf32>
    %c0_7 = arith.constant 0 : index
    %c0_8 = arith.constant 0 : index
    %11 = vector.load %arg8[%c0_7, %c0_8] : memref<16x256xf32, #tpu.memory_space<vmem>>, vector<16x256xf32>
    %12 = arith.truncf %10 : vector<16x256xf32> to vector<16x256xbf16>
    %c0_9 = arith.constant 0 : index
    %c0_10 = arith.constant 0 : index
    %13 = vector.load %arg5[%c0_9, %c0_10] : memref<256x256xbf16, #tpu.memory_space<vmem>>, vector<256x256xbf16>
    %cst_11 = arith.constant dense<0.000000e+00> : vector<16x256xf32>
    %14 = tpu.matmul %12, %13, %cst_11 {dimension_numbers = #tpu.dot_dimension_numbers<[1], [0], [0], [1], [0, 0, 1, 1], [], []>} : vector<16x256xbf16>, vector<256x256xbf16>, vector<16x256xf32> -> vector<16x256xf32>
    %15 = arith.addf %11, %14 : vector<16x256xf32>
    %c0_12 = arith.constant 0 : index
    %c0_13 = arith.constant 0 : index
    %16 = vector.load %arg8[%c0_12, %c0_13] : memref<16x256xf32, #tpu.memory_space<vmem>>, vector<16x256xf32>
    tpu.vector_store %arg8[%c0_12, %c0_13], %15 {strides = array<i32>} : memref<16x256xf32, #tpu.memory_space<vmem>>, vector<16x256xf32>,
    %c0_i32_14 = arith.constant 0 : i32
    %17 = arith.cmpi eq, %arg1, %c0_i32_14 : i32
    %18 = arith.extui %17 : i1 to i32
    %c0_i32_15 = arith.constant 0 : i32
    %19 = arith.cmpi ne, %18, %c0_i32_15 : i32
    scf.if %19 {
      %c0_16 = arith.constant 0 : index
      %c0_17 = arith.constant 0 : index
      %20 = vector.load %arg8[%c0_16, %c0_17] : memref<16x256xf32, #tpu.memory_space<vmem>>, vector<16x256xf32>
      %c0_18 = arith.constant 0 : index
      %c0_19 = arith.constant 0 : index
      %21 = vector.load %arg6[%c0_18, %c0_19] : memref<1x256xf32, #tpu.memory_space<vmem>>, vector<1x256xf32>
      %22 = vector.broadcast %21 : vector<1x256xf32> to vector<16x256xf32>
      %23 = arith.addf %20, %22 : vector<16x256xf32>
      %c0_20 = arith.constant 0 : index
      %c0_21 = arith.constant 0 : index
      %24 = vector.load %arg7[%c0_20, %c0_21] : memref<16x256xf32, #tpu.memory_space<vmem>>, vector<16x256xf32>
      tpu.vector_store %arg7[%c0_20, %c0_21], %23 {strides = array<i32>} : memref<16x256xf32, #tpu.memory_space<vmem>>, vector<16x256xf32>,
    } else {
    }
    return
  }
  func.func @transform_0(%arg0: i32, %arg1: i32) -> (i32, i32) {
    %c0_i32 = arith.constant 0 : i32
    %c0_i32_0 = arith.constant 0 : i32
    return %arg0, %c0_i32 : i32, i32
  }
  func.func @transform_1(%arg0: i32, %arg1: i32) -> (i32, i32) {
    %c0_i32 = arith.constant 0 : i32
    %c0_i32_0 = arith.constant 0 : i32
    return %c0_i32, %arg1 : i32, i32
  }
  func.func @transform_2(%arg0: i32, %arg1: i32) -> (i32, i32) {
    %c0_i32 = arith.constant 0 : i32
    %c0_i32_0 = arith.constant 0 : i32
    return %c0_i32, %arg1 : i32, i32
  }
  func.func @transform_3(%arg0: i32, %arg1: i32) -> (i32, i32) {
    %c0_i32 = arith.constant 0 : i32
    %c0_i32_0 = arith.constant 0 : i32
    return %arg1, %c0_i32 : i32, i32
  }
  func.func @transform_4(%arg0: i32, %arg1: i32) -> (i32, i32) {
    %c0_i32 = arith.constant 0 : i32
    %c0_i32_0 = arith.constant 0 : i32
    %c0_i32_1 = arith.constant 0 : i32
    return %c0_i32, %c0_i32_0 : i32, i32
  }
  func.func @transform_5(%arg0: i32, %arg1: i32) -> (i32, i32) {
    %c0_i32 = arith.constant 0 : i32
    %c0_i32_0 = arith.constant 0 : i32
    return %arg0, %c0_i32 : i32, i32
  }
}

module attributes {stable_mosaic.version = 11 : i64} {
  func.func @two_layer_kernel(%arg0: i32, %arg1: i32, %arg2: memref<16x64xbf16, #tpu.memory_space<vmem>>, %arg3: memref<64x256xbf16, #tpu.memory_space<vmem>>, %arg4: memref<1x256xf32, #tpu.memory_space<vmem>>, %arg5: memref<256x256xbf16, #tpu.memory_space<vmem>>, %arg6: memref<1x256xf32, #tpu.memory_space<vmem>>, %arg7: memref<16x256xf32, #tpu.memory_space<vmem>>, %arg8: memref<16x256xf32, #tpu.memory_space<vmem>>) attributes {dimension_semantics = [#tpu.dimension_semantics<parallel>, #tpu.dimension_semantics<arbitrary>], iteration_bounds = array<i64: 1, 1>, scalar_prefetch = 0 : i64, scratch_operands = 1 : i64, tpu.core_type = #tpu.core_type<tc>, window_params = [{transform_indices = @transform_0, window_bounds = array<i64: 16, 64>}, {transform_indices = @transform_1, window_bounds = array<i64: 64, 256>}, {transform_indices = @transform_2, window_bounds = array<i64: 1, 256>}, {transform_indices = @transform_3, window_bounds = array<i64: 256, 256>}, {pipeline_mode = #tpu.pipeline_mode<synchronous>, transform_indices = @transform_4, window_bounds = array<i64: 1, 256>}, {transform_indices = @transform_5, window_bounds = array<i64: 16, 256>}]} {
    %c0_i32 = arith.constant 0 : i32
    %0 = arith.cmpi eq, %arg1, %c0_i32 : i32
    %1 = arith.extui %0 : i1 to i32
    %c0_i32_0 = arith.constant 0 : i32
    %2 = arith.cmpi ne, %1, %c0_i32_0 : i32
    scf.if %2 {
      %cst_16 = arith.constant 0.000000e+00 : f32
      %20 = vector.broadcast %cst_16 : f32 to vector<16x256xf32>
      %c0_17 = arith.constant 0 : index
      %c0_18 = arith.constant 0 : index
      %21 = vector.load %arg8[%c0_17, %c0_18] : memref<16x256xf32, #tpu.memory_space<vmem>>, vector<16x256xf32>
      tpu.vector_store %arg8[%c0_17, %c0_18], %20 {strides = array<i32>} : memref<16x256xf32, #tpu.memory_space<vmem>>, vector<16x256xf32>,
    } else {
    }
    %c0 = arith.constant 0 : index
    %c0_1 = arith.constant 0 : index
    %3 = vector.load %arg2[%c0, %c0_1] : memref<16x64xbf16, #tpu.memory_space<vmem>>, vector<16x64xbf16>
    %c0_2 = arith.constant 0 : index
    %c0_3 = arith.constant 0 : index
    %4 = vector.load %arg3[%c0_2, %c0_3] : memref<64x256xbf16, #tpu.memory_space<vmem>>, vector<64x256xbf16>
    %cst = arith.constant dense<0.000000e+00> : vector<16x256xf32>
    %5 = tpu.matmul %3, %4, %cst {dimension_numbers = #tpu.dot_dimension_numbers<[1], [0], [0], [1], [0, 0, 1, 1], [], []>} : vector<16x64xbf16>, vector<64x256xbf16>, vector<16x256xf32> -> vector<16x256xf32>
    %c0_4 = arith.constant 0 : index
    %c0_5 = arith.constant 0 : index
    %6 = vector.load %arg4[%c0_4, %c0_5] : memref<1x256xf32, #tpu.memory_space<vmem>>, vector<1x256xf32>
    %7 = vector.broadcast %6 : vector<1x256xf32> to vector<16x256xf32>
    %8 = arith.addf %5, %7 : vector<16x256xf32>
    %cst_6 = arith.constant 0.000000e+00 : f32
    %9 = vector.broadcast %cst_6 : f32 to vector<16x256xf32>
    %10 = arith.maximumf %8, %9 : vector<16x256xf32>
    %c0_7 = arith.constant 0 : index
    %c0_8 = arith.constant 0 : index
    %11 = vector.load %arg8[%c0_7, %c0_8] : memref<16x256xf32, #tpu.memory_space<vmem>>, vector<16x256xf32>
    %12 = arith.truncf %10 : vector<16x256xf32> to vector<16x256xbf16>
    %c0_9 = arith.constant 0 : index
    %c0_10 = arith.constant 0 : index
    %13 = vector.load %arg5[%c0_9, %c0_10] : memref<256x256xbf16, #tpu.memory_space<vmem>>, vector<256x256xbf16>
    %cst_11 = arith.constant dense<0.000000e+00> : vector<16x256xf32>
    %14 = tpu.matmul %12, %13, %cst_11 {dimension_numbers = #tpu.dot_dimension_numbers<[1], [0], [0], [1], [0, 0, 1, 1], [], []>} : vector<16x256xbf16>, vector<256x256xbf16>, vector<16x256xf32> -> vector<16x256xf32>
    %15 = arith.addf %11, %14 : vector<16x256xf32>
    %c0_12 = arith.constant 0 : index
    %c0_13 = arith.constant 0 : index
    %16 = vector.load %arg8[%c0_12, %c0_13] : memref<16x256xf32, #tpu.memory_space<vmem>>, vector<16x256xf32>
    tpu.vector_store %arg8[%c0_12, %c0_13], %15 {strides = array<i32>} : memref<16x256xf32, #tpu.memory_space<vmem>>, vector<16x256xf32>,
    %c0_i32_14 = arith.constant 0 : i32
    %17 = arith.cmpi eq, %arg1, %c0_i32_14 : i32
    %18 = arith.extui %17 : i1 to i32
    %c0_i32_15 = arith.constant 0 : i32
    %19 = arith.cmpi ne, %18, %c0_i32_15 : i32
    scf.if %19 {
      %c0_16 = arith.constant 0 : index
      %c0_17 = arith.constant 0 : index
      %20 = vector.load %arg8[%c0_16, %c0_17] : memref<16x256xf32, #tpu.memory_space<vmem>>, vector<16x256xf32>
      %c0_18 = arith.constant 0 : index
      %c0_19 = arith.constant 0 : index
      %21 = vector.load %arg6[%c0_18, %c0_19] : memref<1x256xf32, #tpu.memory_space<vmem>>, vector<1x256xf32>
      %22 = vector.broadcast %21 : vector<1x256xf32> to vector<16x256xf32>
      %23 = arith.addf %20, %22 : vector<16x256xf32>
      %c0_20 = arith.constant 0 : index
      %c0_21 = arith.constant 0 : index
      %24 = vector.load %arg7[%c0_20, %c0_21] : memref<16x256xf32, #tpu.memory_space<vmem>>, vector<16x256xf32>
      tpu.vector_store %arg7[%c0_20, %c0_21], %23 {strides = array<i32>} : memref<16x256xf32, #tpu.memory_space<vmem>>, vector<16x256xf32>,
    } else {
    }
    return
  }
  func.func @transform_0(%arg0: i32, %arg1: i32) -> (i32, i32) {
    %c0_i32 = arith.constant 0 : i32
    %c0_i32_0 = arith.constant 0 : i32
    return %arg0, %c0_i32 : i32, i32
  }
  func.func @transform_1(%arg0: i32, %arg1: i32) -> (i32, i32) {
    %c0_i32 = arith.constant 0 : i32
    %c0_i32_0 = arith.constant 0 : i32
    return %c0_i32, %arg1 : i32, i32
  }
  func.func @transform_2(%arg0: i32, %arg1: i32) -> (i32, i32) {
    %c0_i32 = arith.constant 0 : i32
    %c0_i32_0 = arith.constant 0 : i32
    return %c0_i32, %arg1 : i32, i32
  }
  func.func @transform_3(%arg0: i32, %arg1: i32) -> (i32, i32) {
    %c0_i32 = arith.constant 0 : i32
    %c0_i32_0 = arith.constant 0 : i32
    return %arg1, %c0_i32 : i32, i32
  }
  func.func @transform_4(%arg0: i32, %arg1: i32) -> (i32, i32) {
    %c0_i32 = arith.constant 0 : i32
    %c0_i32_0 = arith.constant 0 : i32
    %c0_i32_1 = arith.constant 0 : i32
    return %c0_i32, %c0_i32_0 : i32, i32
  }
  func.func @transform_5(%arg0: i32, %arg1: i32) -> (i32, i32) {
    %c0_i32 = arith.constant 0 : i32
    %c0_i32_0 = arith.constant 0 : i32
    return %arg0, %c0_i32 : i32, i32
  }
}

</mosaic_0001>

<bundles_post_ra>
// kernel: two_layer_net_apply.1
= control target key start
LH: loop header
LB: loop body
LE: loop exit
PB: predicated region body
PF: predicated region fallthrough
CT: control target
= control target key end

     0   :  { %10 = vsyncpa [#allocation4], 0  ;;  %s693_s0 = inlined_call_operand.vmem [shape: bf16[16,64], index: 0, kind: input, shape index: {}]   ;;  %s694_s1 = inlined_call_operand.hbm [shape: bf16[64,256], index: 1, kind: input, shape index: {}]   ;;  %s695_s2 = inlined_call_operand.vmem [shape: f32[1,256], index: 2, kind: input, shape index: {}]   ;;  %s696_s3 = inlined_call_operand.hbm [shape: bf16[256,256], index: 3, kind: input, shape index: {}]   ;;  %s697_s4 = inlined_call_operand.vmem [shape: f32[1,256], index: 4, kind: input, shape index: {}]   ;;  %s698_s5 = inlined_call_operand.vmem [shape: f32[16,256], index: 5, kind: output, shape index: {}]  }
   0x1   :  { %11 = vsyncpa [#allocation6], 0  ;;  %s613_s18 = smov [#allocation3]   ;;  %s565_s22 = scalar_lea.hbm %s694_s1, 1024 }
   0x2   :  { %s19_s19 = sshll.u32 %s613_s18, 4  ;;  %p566_p0 = scmp.ne.s32.totalorder %s694_s1, %s565_s22  ;;  %s20_s19 = int_to_ptr.vmem [resolvable:$true] %s19_s19 }
   0x3   :  { %p569_p1 = scmp.lt.u32.totalorder %s565_s22, %s694_s1 }
   0x5   :  { %p571_p2 = pnand %p569_p1, %p566_p0 }
   0x7   :  { %574 = shalt.err (!%p571_p2)
}
   0x8   :  { %s575_s27 = scalar_lea.vmem %s20_s19, 1024  ;;  %p580_p4 = scmp.lt.s32.totalorder %s20_s19, %s20_s19 }
   0x9   :  { %p576_p3 = scmp.ne.s32.totalorder %s20_s19, %s575_s27  ;;  %p581_p5 = scmp.lt.s32.totalorder %s575_s27, %s575_s27 }
   0xb   :  { %p582_p6 = por %p581_p5, %p580_p4 }
   0xd   :  { %p583_p7 = pnand %p582_p6, %p576_p3 }
   0xf   :  { %586 = shalt.err (!%p583_p7)
}
  0x10   :  { %s614_s28 = smov 128   ;;  %s615_s29 = smov 8  }
  0x11   :  { %25 = dma.hbm_to_vmem [thread:$0]  %s694_s1, 1024, %s20_s19, [#allocation4], %s614_s28, %s614_s28, %s615_s29  }
  0x12   :  { %s616_s7 = smov [#allocation5]   ;;  %s587_s11 = scalar_lea.hbm %s696_s3, 4096 }
  0x13   :  { %s33_s8 = sshll.u32 %s616_s7, 4  ;;  %p588_p8 = scmp.ne.s32.totalorder %s696_s3, %s587_s11  ;;  %s34_s8 = int_to_ptr.vmem [resolvable:$true] %s33_s8 }
  0x14   :  { %p591_p9 = scmp.lt.u32.totalorder %s587_s11, %s696_s3 }
  0x16   :  { %p593_p10 = pnand %p591_p9, %p588_p8 }
  0x18   :  { %596 = shalt.err (!%p593_p10)
}
  0x19   :  { %s597_s16 = scalar_lea.vmem %s34_s8, 4096  ;;  %p602_p12 = scmp.lt.s32.totalorder %s34_s8, %s34_s8 }
  0x1a   :  { %p598_p11 = scmp.ne.s32.totalorder %s34_s8, %s597_s16  ;;  %p603_p13 = scmp.lt.s32.totalorder %s597_s16, %s597_s16 }
  0x1c   :  { %p604_p0 = por %p603_p13, %p602_p12 }
  0x1e   :  { %p605_p1 = pnand %p604_p0, %p598_p11 }
  0x20   :  { %608 = shalt.err (!%p605_p1)
}
  0x21   :  { %39 = dma.hbm_to_vmem [thread:$0]  %s696_s3, 4096, %s34_s8, [#allocation6], %s614_s28, %s614_s28, %s615_s29  }
  0x22   :  { %609 = dma.done.wait [#allocation4], 1024  }
  0x23   :  { %610 = vsyncadd [#allocation4], 4294966272 }
  0x24   :  { %611 = dma.done.wait [#allocation6], 4096  }
  0x25   :  { %612 = vsyncadd [#allocation6], 4294963200  ;;  %v617_v0 = vmov 0   ;;  %v504_v1 = vld [vmem:[#allocation3 + $0x4] ss:$8 sps:$4 sm:$0xff]   ;;  %vm124_vm0 = vcmask 523264   ;;  %v69_v42 = vlaneseq }
  0x26   :  { %160 = vmatprep.mubr.bf16.mxu0 %v617_v0  ;;  %v506_v2 = vld [vmem:[#allocation3] ss:$8 sps:$4 sm:$0xff]   ;;  %128 = vmatprep.subr.bf16.mxu0 %v504_v1  ;;  %v507_v3 = vld [vmem:[#allocation3 + $0x14] ss:$8 sps:$4 sm:$0xff]   ;;  %v509_v4 = vld [vmem:[#allocation3 + $0x10] ss:$8 sps:$4 sm:$0xff]  }
  0x27   :  { %129 = vmatpush1.bf16.msra.mxu0 %v506_v2  ;;  %v510_v5 = vld [vmem:[#allocation3 + $0x24] ss:$8 sps:$4 sm:$0xff]   ;;  %v512_v6 = vld [vmem:[#allocation3 + $0x20] ss:$8 sps:$4 sm:$0xff]   ;;  %v513_v9 = vld [vmem:[#allocation3 + $0x34] ss:$8 sps:$4 sm:$0xff]  }
  0x28   :  { %130 = vmatprep.subr.bf16.mxu0 %v507_v3  ;;  %v517_v7 = vld [vmem:[#allocation5 + $0x4] ss:$8 sps:$4 sm:$0xff]   ;;  %v519_v8 = vld [vmem:[#allocation5] ss:$8 sps:$4 sm:$0xff]   ;;  %v520_v10 = vld [vmem:[#allocation5 + $0x14] ss:$8 sps:$4 sm:$0xff]  }
  0x29   :  { %373 = vmatprep.subr.bf16.mxu1 %v517_v7  ;;  %v522_v11 = vld [vmem:[#allocation5 + $0x10] ss:$8 sps:$4 sm:$0xff]   ;;  %v523_v13 = vld [vmem:[#allocation5 + $0x24] ss:$8 sps:$4 sm:$0xff]   ;;  %v525_v15 = vld [vmem:[#allocation5 + $0x20] ss:$8 sps:$4 sm:$0xff]  }
  0x2a   :  { %374 = vmatpush1.bf16.msra.mxu1 %v519_v8  ;;  %v515_v12 = vld [vmem:[#allocation3 + $0x30] ss:$8 sps:$4 sm:$0xff]   ;;  %v516_v14 = vld [vmem:[%s693_s0] sm:$0xff]   ;;  %v526_v16 = vld [vmem:[#allocation5 + $0x34] ss:$8 sps:$4 sm:$0xff]   ;;  %v70_v43 = vshrl.u32 %v69_v42, 7 }
  0x2b   :  { %131 = vmatpush1.bf16.msra.mxu0 %v509_v4  ;;  %375 = vmatprep.subr.bf16.mxu1 %v520_v10  ;;  %v528_v17 = vld [vmem:[#allocation5 + $0x30] ss:$8 sps:$4 sm:$0xff]   ;;  %v529_v18 = vld [vmem:[#allocation5 + $0x44] ss:$8 sps:$4 sm:$0xff]   ;;  %v531_v19 = vld [vmem:[#allocation5 + $0x40] ss:$8 sps:$4 sm:$0xff]  }
  0x2c   :  { %132 = vmatprep.subr.bf16.mxu0 %v510_v5  ;;  %v532_v20 = vld [vmem:[#allocation5 + $0x54] ss:$8 sps:$4 sm:$0xff]   ;;  %v534_v21 = vld [vmem:[#allocation5 + $0x50] ss:$8 sps:$4 sm:$0xff]   ;;  %v535_v22 = vld [vmem:[#allocation5 + $0x64] ss:$8 sps:$4 sm:$0xff]  }
  0x2d   :  { %v537_v23 = vld [vmem:[#allocation5 + $0x60] ss:$8 sps:$4 sm:$0xff]   ;;  %v538_v24 = vld [vmem:[#allocation5 + $0x74] ss:$8 sps:$4 sm:$0xff]   ;;  %v540_v25 = vld [vmem:[#allocation5 + $0x70] ss:$8 sps:$4 sm:$0xff]  }
  0x2e   :  { %376 = vmatpush1.bf16.msra.mxu1 %v522_v11  ;;  %v541_v26 = vld [vmem:[#allocation5 + $0x84] ss:$8 sps:$4 sm:$0xff]   ;;  %v543_v27 = vld [vmem:[#allocation5 + $0x80] ss:$8 sps:$4 sm:$0xff]   ;;  %v544_v28 = vld [vmem:[#allocation5 + $0x94] ss:$8 sps:$4 sm:$0xff]  }
  0x2f   :  { %133 = vmatpush1.bf16.msra.mxu0 %v512_v6  ;;  %377 = vmatprep.subr.bf16.mxu1 %v523_v13  ;;  %v546_v29 = vld [vmem:[#allocation5 + $0x90] ss:$8 sps:$4 sm:$0xff]   ;;  %v547_v30 = vld [vmem:[#allocation5 + $0xa4] ss:$8 sps:$4 sm:$0xff]   ;;  %v549_v31 = vld [vmem:[#allocation5 + $0xa0] ss:$8 sps:$4 sm:$0xff]  }
  0x30   :  { %134 = vmatprep.subr.bf16.mxu0 %v513_v9  ;;  %v550_v32 = vld [vmem:[#allocation5 + $0xb4] ss:$8 sps:$4 sm:$0xff]   ;;  %v552_v33 = vld [vmem:[#allocation5 + $0xb0] ss:$8 sps:$4 sm:$0xff]   ;;  %v553_v34 = vld [vmem:[#allocation5 + $0xc4] ss:$8 sps:$4 sm:$0xff]  }
  0x31   :  { %v555_v35 = vld [vmem:[#allocation5 + $0xc0] ss:$8 sps:$4 sm:$0xff]   ;;  %v556_v36 = vld [vmem:[#allocation5 + $0xd4] ss:$8 sps:$4 sm:$0xff]   ;;  %v558_v37 = vld [vmem:[#allocation5 + $0xd0] ss:$8 sps:$4 sm:$0xff]  }
  0x32   :  { %378 = vmatpush1.bf16.msra.mxu1 %v525_v15  ;;  %v559_v38 = vld [vmem:[#allocation5 + $0xe4] ss:$8 sps:$4 sm:$0xff]   ;;  %v561_v39 = vld [vmem:[#allocation5 + $0xe0] ss:$8 sps:$4 sm:$0xff]   ;;  %v562_v40 = vld [vmem:[#allocation5 + $0xf4] ss:$8 sps:$4 sm:$0xff]  }
  0x33   :  { %135 = vmatpush1.bf16.msra.mxu0 %v515_v12  ;;  %379 = vmatprep.subr.bf16.mxu1 %v526_v16  ;;  %v564_v41 = vld [vmem:[#allocation5 + $0xf0] ss:$8 sps:$4 sm:$0xff]   ;;  %v71_v44 = vsub.s32 0, %v70_v43  ;;  %v67_v45 = vld [vmem:[%s695_s2] sm:$0x3]  ;;  %v75_v46 = vsub.s32 1, %v70_v43 }
  0x34   :  { %v431_v63 = vld [vmem:[%s697_s4] sm:$0x3] }
  0x35   :  { %v72_v47 = vrot.slane %v67_v45, %v71_v44  ;;  %v76_v48 = vrot.slane %v67_v45, %v75_v46  ;;  %v436_v0 = vrot.slane %v431_v63, %v71_v44  ;;  %v440_v1 = vrot.slane %v431_v63, %v75_v46 }
  0x36   :  { %466 = vmatmul.mubr.msk.bf16.vlgmr.msra.gmra.mrb[0].mxu0 %vm124_vm0, %v516_v14  ;;  %380 = vmatpush1.bf16.msra.mxu1 %v528_v17 }
  0x37   :  { %381 = vmatprep.subr.bf16.mxu1 %v529_v18 }
  0x3a   :  { %382 = vmatpush1.bf16.msra.mxu1 %v531_v19 }
  0x3b   :  { %383 = vmatprep.subr.bf16.mxu1 %v532_v20 }
  0x3e   :  { %384 = vmatpush1.bf16.msra.mxu1 %v534_v21 }
  0x3f   :  { %385 = vmatprep.subr.bf16.mxu1 %v535_v22 }
  0x42   :  { %386 = vmatpush1.bf16.msra.mxu1 %v537_v23 }
  0x43   :  { %387 = vmatprep.subr.bf16.mxu1 %v538_v24 }
  0x46   :  { %388 = vmatpush1.bf16.msra.mxu1 %v540_v25 }
  0x47   :  { %389 = vmatprep.subr.bf16.mxu1 %v541_v26 }
  0x4a   :  { %390 = vmatpush1.bf16.msra.mxu1 %v543_v27 }
  0x4b   :  { %391 = vmatprep.subr.bf16.mxu1 %v544_v28 }
  0x4e   :  { %392 = vmatpush1.bf16.msra.mxu1 %v546_v29 }
  0x4f   :  { %393 = vmatprep.subr.bf16.mxu1 %v547_v30 }
  0x52   :  { %394 = vmatpush1.bf16.msra.mxu1 %v549_v31 }
  0x53   :  { %395 = vmatprep.subr.bf16.mxu1 %v550_v32 }
  0x56   :  { %396 = vmatpush1.bf16.msra.mxu1 %v552_v33 }
  0x57   :  { %397 = vmatprep.subr.bf16.mxu1 %v553_v34 }
  0x5a   :  { %398 = vmatpush1.bf16.msra.mxu1 %v555_v35 }
  0x5b   :  { %399 = vmatprep.subr.bf16.mxu1 %v556_v36 }
  0x5e   :  { %400 = vmatpush1.bf16.msra.mxu1 %v558_v37 }
  0x5f   :  { %401 = vmatprep.subr.bf16.mxu1 %v559_v38 }
  0x62   :  { %402 = vmatpush1.bf16.msra.mxu1 %v561_v39 }
  0x63   :  { %403 = vmatprep.subr.bf16.mxu1 %v562_v40 }
  0x66   :  { %404 = vmatpush1.bf16.msra.mxu1 %v564_v41 }
 0x109   :  { %v162_v49 = vpop.f32.mrb[0].mxu0 }
 0x10a   :  { %v163_v50 = vadd.f32 %v162_v49, %v72_v47  ;;  %v164_v51 = vpop.f32.mrb[1].mxu0 }
 0x10b   :  { %v165_v52 = vadd.f32 %v164_v51, %v76_v48  ;;  %v166_v53 = vpop.f32.mrb[2].mxu0 }
 0x10c   :  { %v167_v54 = vadd.f32 %v166_v53, %v72_v47  ;;  %v168_v55 = vpop.f32.mrb[3].mxu0  ;;  %v171_v57 = vmax.f32 %v163_v50, 0.0 }
 0x10d   :  { %v169_v56 = vadd.f32 %v168_v55, %v76_v48  ;;  %v172_v59 = vmax.f32 %v165_v52, 0.0 }
 0x10e   :  { %v173_v58 = vmax.f32 %v167_v54, 0.0 }
 0x10f   :  { %v174_v60 = vmax.f32 %v169_v56, 0.0 }
 0x110   :  { %v179_v61 = vpack.c.bf16 %v173_v58, %v171_v57 }
 0x111   :  { %v180_v62 = vpack.c.bf16 %v174_v60, %v172_v59 }
 0x113   :  { %405 = vmatprep.mubr.bf16.mxu1 %v180_v62 }
 0x114   :  { %406 = vmatmul.mubr.bf16.vlgmr.msra.gmra.mrb[0].mxu1 %v179_v61 }
 0x1e7   :  { %v407_v2 = vpop.f32.mrb[0].mxu1 }
 0x1e8   :  { %v443_v3 = vadd.f32 %v436_v0, %v407_v2  ;;  %v409_v4 = vpop.f32.mrb[1].mxu1 }
 0x1e9   :  { %v444_v5 = vadd.f32 %v440_v1, %v409_v4  ;;  %v411_v6 = vpop.f32.mrb[2].mxu1 }
 0x1ea   :  { %447 = vst [vmem:[%s698_s5] sm:$0xff] %v443_v3  ;;  %v445_v7 = vadd.f32 %v436_v0, %v411_v6  ;;  %v413_v8 = vpop.f32.mrb[3].mxu1 }
 0x1eb   :  { %448 = vst [vmem:[%s698_s5 + $0x8] sm:$0xff] %v444_v5  ;;  %v446_v9 = vadd.f32 %v440_v1, %v413_v8 }
 0x1ec   :  { %449 = vst [vmem:[%s698_s5 + $0x10] sm:$0xff] %v445_v7 }
 0x1ed   :  { %450 = vst [vmem:[%s698_s5 + $0x18] sm:$0xff] %v446_v9 }
 0x1ee   :  { %455 = vsyncpa [#allocation4], 1 }
 0x1ef   :  { %456 = vsyncpa [#allocation6], 1 }

// kernel: two_layer_net_apply.1
= control target key start
LH: loop header
LB: loop body
LE: loop exit
PB: predicated region body
PF: predicated region fallthrough
CT: control target
= control target key end

     0   :  { %10 = vsyncpa [#allocation4], 0  ;;  %s693_s0 = inlined_call_operand.vmem [shape: bf16[16,64], index: 0, kind: input, shape index: {}]   ;;  %s694_s1 = inlined_call_operand.hbm [shape: bf16[64,256], index: 1, kind: input, shape index: {}]   ;;  %s695_s2 = inlined_call_operand.vmem [shape: f32[1,256], index: 2, kind: input, shape index: {}]   ;;  %s696_s3 = inlined_call_operand.hbm [shape: bf16[256,256], index: 3, kind: input, shape index: {}]   ;;  %s697_s4 = inlined_call_operand.vmem [shape: f32[1,256], index: 4, kind: input, shape index: {}]   ;;  %s698_s5 = inlined_call_operand.vmem [shape: f32[16,256], index: 5, kind: output, shape index: {}]  }
   0x1   :  { %11 = vsyncpa [#allocation6], 0  ;;  %s613_s18 = smov [#allocation3]   ;;  %s565_s22 = scalar_lea.hbm %s694_s1, 1024 }
   0x2   :  { %s19_s19 = sshll.u32 %s613_s18, 4  ;;  %p566_p0 = scmp.ne.s32.totalorder %s694_s1, %s565_s22  ;;  %s20_s19 = int_to_ptr.vmem [resolvable:$true] %s19_s19 }
   0x3   :  { %p569_p1 = scmp.lt.u32.totalorder %s565_s22, %s694_s1 }
   0x5   :  { %p571_p2 = pnand %p569_p1, %p566_p0 }
   0x7   :  { %574 = shalt.err (!%p571_p2)
}
   0x8   :  { %s575_s27 = scalar_lea.vmem %s20_s19, 1024  ;;  %p580_p4 = scmp.lt.s32.totalorder %s20_s19, %s20_s19 }
   0x9   :  { %p576_p3 = scmp.ne.s32.totalorder %s20_s19, %s575_s27  ;;  %p581_p5 = scmp.lt.s32.totalorder %s575_s27, %s575_s27 }
   0xb   :  { %p582_p6 = por %p581_p5, %p580_p4 }
   0xd   :  { %p583_p7 = pnand %p582_p6, %p576_p3 }
   0xf   :  { %586 = shalt.err (!%p583_p7)
}
  0x10   :  { %s614_s28 = smov 128   ;;  %s615_s29 = smov 8  }
  0x11   :  { %25 = dma.hbm_to_vmem [thread:$0]  %s694_s1, 1024, %s20_s19, [#allocation4], %s614_s28, %s614_s28, %s615_s29  }
  0x12   :  { %s616_s7 = smov [#allocation5]   ;;  %s587_s11 = scalar_lea.hbm %s696_s3, 4096 }
  0x13   :  { %s33_s8 = sshll.u32 %s616_s7, 4  ;;  %p588_p8 = scmp.ne.s32.totalorder %s696_s3, %s587_s11  ;;  %s34_s8 = int_to_ptr.vmem [resolvable:$true] %s33_s8 }
  0x14   :  { %p591_p9 = scmp.lt.u32.totalorder %s587_s11, %s696_s3 }
  0x16   :  { %p593_p10 = pnand %p591_p9, %p588_p8 }
  0x18   :  { %596 = shalt.err (!%p593_p10)
}
  0x19   :  { %s597_s16 = scalar_lea.vmem %s34_s8, 4096  ;;  %p602_p12 = scmp.lt.s32.totalorder %s34_s8, %s34_s8 }
  0x1a   :  { %p598_p11 = scmp.ne.s32.totalorder %s34_s8, %s597_s16  ;;  %p603_p13 = scmp.lt.s32.totalorder %s597_s16, %s597_s16 }
  0x1c   :  { %p604_p0 = por %p603_p13, %p602_p12 }
  0x1e   :  { %p605_p1 = pnand %p604_p0, %p598_p11 }
  0x20   :  { %608 = shalt.err (!%p605_p1)
}
  0x21   :  { %39 = dma.hbm_to_vmem [thread:$0]  %s696_s3, 4096, %s34_s8, [#allocation6], %s614_s28, %s614_s28, %s615_s29  }
  0x22   :  { %609 = dma.done.wait [#allocation4], 1024  }
  0x23   :  { %610 = vsyncadd [#allocation4], 4294966272 }
  0x24   :  { %611 = dma.done.wait [#allocation6], 4096  }
  0x25   :  { %612 = vsyncadd [#allocation6], 4294963200  ;;  %v617_v0 = vmov 0   ;;  %v504_v1 = vld [vmem:[#allocation3 + $0x4] ss:$8 sps:$4 sm:$0xff]   ;;  %vm124_vm0 = vcmask 523264   ;;  %v69_v42 = vlaneseq }
  0x26   :  { %160 = vmatprep.mubr.bf16.mxu0 %v617_v0  ;;  %v506_v2 = vld [vmem:[#allocation3] ss:$8 sps:$4 sm:$0xff]   ;;  %128 = vmatprep.subr.bf16.mxu0 %v504_v1  ;;  %v507_v3 = vld [vmem:[#allocation3 + $0x14] ss:$8 sps:$4 sm:$0xff]   ;;  %v509_v4 = vld [vmem:[#allocation3 + $0x10] ss:$8 sps:$4 sm:$0xff]  }
  0x27   :  { %129 = vmatpush1.bf16.msra.mxu0 %v506_v2  ;;  %v510_v5 = vld [vmem:[#allocation3 + $0x24] ss:$8 sps:$4 sm:$0xff]   ;;  %v512_v6 = vld [vmem:[#allocation3 + $0x20] ss:$8 sps:$4 sm:$0xff]   ;;  %v513_v9 = vld [vmem:[#allocation3 + $0x34] ss:$8 sps:$4 sm:$0xff]  }
  0x28   :  { %130 = vmatprep.subr.bf16.mxu0 %v507_v3  ;;  %v517_v7 = vld [vmem:[#allocation5 + $0x4] ss:$8 sps:$4 sm:$0xff]   ;;  %v519_v8 = vld [vmem:[#allocation5] ss:$8 sps:$4 sm:$0xff]   ;;  %v520_v10 = vld [vmem:[#allocation5 + $0x14] ss:$8 sps:$4 sm:$0xff]  }
  0x29   :  { %373 = vmatprep.subr.bf16.mxu1 %v517_v7  ;;  %v522_v11 = vld [vmem:[#allocation5 + $0x10] ss:$8 sps:$4 sm:$0xff]   ;;  %v523_v13 = vld [vmem:[#allocation5 + $0x24] ss:$8 sps:$4 sm:$0xff]   ;;  %v525_v15 = vld [vmem:[#allocation5 + $0x20] ss:$8 sps:$4 sm:$0xff]  }
  0x2a   :  { %374 = vmatpush1.bf16.msra.mxu1 %v519_v8  ;;  %v515_v12 = vld [vmem:[#allocation3 + $0x30] ss:$8 sps:$4 sm:$0xff]   ;;  %v516_v14 = vld [vmem:[%s693_s0] sm:$0xff]   ;;  %v526_v16 = vld [vmem:[#allocation5 + $0x34] ss:$8 sps:$4 sm:$0xff]   ;;  %v70_v43 = vshrl.u32 %v69_v42, 7 }
  0x2b   :  { %131 = vmatpush1.bf16.msra.mxu0 %v509_v4  ;;  %375 = vmatprep.subr.bf16.mxu1 %v520_v10  ;;  %v528_v17 = vld [vmem:[#allocation5 + $0x30] ss:$8 sps:$4 sm:$0xff]   ;;  %v529_v18 = vld [vmem:[#allocation5 + $0x44] ss:$8 sps:$4 sm:$0xff]   ;;  %v531_v19 = vld [vmem:[#allocation5 + $0x40] ss:$8 sps:$4 sm:$0xff]  }
  0x2c   :  { %132 = vmatprep.subr.bf16.mxu0 %v510_v5  ;;  %v532_v20 = vld [vmem:[#allocation5 + $0x54] ss:$8 sps:$4 sm:$0xff]   ;;  %v534_v21 = vld [vmem:[#allocation5 + $0x50] ss:$8 sps:$4 sm:$0xff]   ;;  %v535_v22 = vld [vmem:[#allocation5 + $0x64] ss:$8 sps:$4 sm:$0xff]  }
  0x2d   :  { %v537_v23 = vld [vmem:[#allocation5 + $0x60] ss:$8 sps:$4 sm:$0xff]   ;;  %v538_v24 = vld [vmem:[#allocation5 + $0x74] ss:$8 sps:$4 sm:$0xff]   ;;  %v540_v25 = vld [vmem:[#allocation5 + $0x70] ss:$8 sps:$4 sm:$0xff]  }
  0x2e   :  { %376 = vmatpush1.bf16.msra.mxu1 %v522_v11  ;;  %v541_v26 = vld [vmem:[#allocation5 + $0x84] ss:$8 sps:$4 sm:$0xff]   ;;  %v543_v27 = vld [vmem:[#allocation5 + $0x80] ss:$8 sps:$4 sm:$0xff]   ;;  %v544_v28 = vld [vmem:[#allocation5 + $0x94] ss:$8 sps:$4 sm:$0xff]  }
  0x2f   :  { %133 = vmatpush1.bf16.msra.mxu0 %v512_v6  ;;  %377 = vmatprep.subr.bf16.mxu1 %v523_v13  ;;  %v546_v29 = vld [vmem:[#allocation5 + $0x90] ss:$8 sps:$4 sm:$0xff]   ;;  %v547_v30 = vld [vmem:[#allocation5 + $0xa4] ss:$8 sps:$4 sm:$0xff]   ;;  %v549_v31 = vld [vmem:[#allocation5 + $0xa0] ss:$8 sps:$4 sm:$0xff]  }
  0x30   :  { %134 = vmatprep.subr.bf16.mxu0 %v513_v9  ;;  %v550_v32 = vld [vmem:[#allocation5 + $0xb4] ss:$8 sps:$4 sm:$0xff]   ;;  %v552_v33 = vld [vmem:[#allocation5 + $0xb0] ss:$8 sps:$4 sm:$0xff]   ;;  %v553_v34 = vld [vmem:[#allocation5 + $0xc4] ss:$8 sps:$4 sm:$0xff]  }
  0x31   :  { %v555_v35 = vld [vmem:[#allocation5 + $0xc0] ss:$8 sps:$4 sm:$0xff]   ;;  %v556_v36 = vld [vmem:[#allocation5 + $0xd4] ss:$8 sps:$4 sm:$0xff]   ;;  %v558_v37 = vld [vmem:[#allocation5 + $0xd0] ss:$8 sps:$4 sm:$0xff]  }
  0x32   :  { %378 = vmatpush1.bf16.msra.mxu1 %v525_v15  ;;  %v559_v38 = vld [vmem:[#allocation5 + $0xe4] ss:$8 sps:$4 sm:$0xff]   ;;  %v561_v39 = vld [vmem:[#allocation5 + $0xe0] ss:$8 sps:$4 sm:$0xff]   ;;  %v562_v40 = vld [vmem:[#allocation5 + $0xf4] ss:$8 sps:$4 sm:$0xff]  }
  0x33   :  { %135 = vmatpush1.bf16.msra.mxu0 %v515_v12  ;;  %379 = vmatprep.subr.bf16.mxu1 %v526_v16  ;;  %v564_v41 = vld [vmem:[#allocation5 + $0xf0] ss:$8 sps:$4 sm:$0xff]   ;;  %v71_v44 = vsub.s32 0, %v70_v43  ;;  %v67_v45 = vld [vmem:[%s695_s2] sm:$0x3]  ;;  %v75_v46 = vsub.s32 1, %v70_v43 }
  0x34   :  { %v431_v63 = vld [vmem:[%s697_s4] sm:$0x3] }
  0x35   :  { %v72_v47 = vrot.slane %v67_v45, %v71_v44  ;;  %v76_v48 = vrot.slane %v67_v45, %v75_v46  ;;  %v436_v0 = vrot.slane %v431_v63, %v71_v44  ;;  %v440_v1 = vrot.slane %v431_v63, %v75_v46 }
  0x36   :  { %466 = vmatmul.mubr.msk.bf16.vlgmr.msra.gmra.mrb[0].mxu0 %vm124_vm0, %v516_v14  ;;  %380 = vmatpush1.bf16.msra.mxu1 %v528_v17 }
  0x37   :  { %381 = vmatprep.subr.bf16.mxu1 %v529_v18 }
  0x3a   :  { %382 = vmatpush1.bf16.msra.mxu1 %v531_v19 }
  0x3b   :  { %383 = vmatprep.subr.bf16.mxu1 %v532_v20 }
  0x3e   :  { %384 = vmatpush1.bf16.msra.mxu1 %v534_v21 }
  0x3f   :  { %385 = vmatprep.subr.bf16.mxu1 %v535_v22 }
  0x42   :  { %386 = vmatpush1.bf16.msra.mxu1 %v537_v23 }
  0x43   :  { %387 = vmatprep.subr.bf16.mxu1 %v538_v24 }
  0x46   :  { %388 = vmatpush1.bf16.msra.mxu1 %v540_v25 }
  0x47   :  { %389 = vmatprep.subr.bf16.mxu1 %v541_v26 }
  0x4a   :  { %390 = vmatpush1.bf16.msra.mxu1 %v543_v27 }
  0x4b   :  { %391 = vmatprep.subr.bf16.mxu1 %v544_v28 }
  0x4e   :  { %392 = vmatpush1.bf16.msra.mxu1 %v546_v29 }
  0x4f   :  { %393 = vmatprep.subr.bf16.mxu1 %v547_v30 }
  0x52   :  { %394 = vmatpush1.bf16.msra.mxu1 %v549_v31 }
  0x53   :  { %395 = vmatprep.subr.bf16.mxu1 %v550_v32 }
  0x56   :  { %396 = vmatpush1.bf16.msra.mxu1 %v552_v33 }
  0x57   :  { %397 = vmatprep.subr.bf16.mxu1 %v553_v34 }
  0x5a   :  { %398 = vmatpush1.bf16.msra.mxu1 %v555_v35 }
  0x5b   :  { %399 = vmatprep.subr.bf16.mxu1 %v556_v36 }
  0x5e   :  { %400 = vmatpush1.bf16.msra.mxu1 %v558_v37 }
  0x5f   :  { %401 = vmatprep.subr.bf16.mxu1 %v559_v38 }
  0x62   :  { %402 = vmatpush1.bf16.msra.mxu1 %v561_v39 }
  0x63   :  { %403 = vmatprep.subr.bf16.mxu1 %v562_v40 }
  0x66   :  { %404 = vmatpush1.bf16.msra.mxu1 %v564_v41 }
 0x109   :  { %v162_v49 = vpop.f32.mrb[0].mxu0 }
 0x10a   :  { %v163_v50 = vadd.f32 %v162_v49, %v72_v47  ;;  %v164_v51 = vpop.f32.mrb[1].mxu0 }
 0x10b   :  { %v165_v52 = vadd.f32 %v164_v51, %v76_v48  ;;  %v166_v53 = vpop.f32.mrb[2].mxu0 }
 0x10c   :  { %v167_v54 = vadd.f32 %v166_v53, %v72_v47  ;;  %v168_v55 = vpop.f32.mrb[3].mxu0  ;;  %v171_v57 = vmax.f32 %v163_v50, 0.0 }
 0x10d   :  { %v169_v56 = vadd.f32 %v168_v55, %v76_v48  ;;  %v172_v59 = vmax.f32 %v165_v52, 0.0 }
 0x10e   :  { %v173_v58 = vmax.f32 %v167_v54, 0.0 }
 0x10f   :  { %v174_v60 = vmax.f32 %v169_v56, 0.0 }
 0x110   :  { %v179_v61 = vpack.c.bf16 %v173_v58, %v171_v57 }
 0x111   :  { %v180_v62 = vpack.c.bf16 %v174_v60, %v172_v59 }
 0x113   :  { %405 = vmatprep.mubr.bf16.mxu1 %v180_v62 }
 0x114   :  { %406 = vmatmul.mubr.bf16.vlgmr.msra.gmra.mrb[0].mxu1 %v179_v61 }
 0x1e7   :  { %v407_v2 = vpop.f32.mrb[0].mxu1 }
 0x1e8   :  { %v443_v3 = vadd.f32 %v436_v0, %v407_v2  ;;  %v409_v4 = vpop.f32.mrb[1].mxu1 }
 0x1e9   :  { %v444_v5 = vadd.f32 %v440_v1, %v409_v4  ;;  %v411_v6 = vpop.f32.mrb[2].mxu1 }
 0x1ea   :  { %447 = vst [vmem:[%s698_s5] sm:$0xff] %v443_v3  ;;  %v445_v7 = vadd.f32 %v436_v0, %v411_v6  ;;  %v413_v8 = vpop.f32.mrb[3].mxu1 }
 0x1eb   :  { %448 = vst [vmem:[%s698_s5 + $0x8] sm:$0xff] %v444_v5  ;;  %v446_v9 = vadd.f32 %v440_v1, %v413_v8 }
 0x1ec   :  { %449 = vst [vmem:[%s698_s5 + $0x10] sm:$0xff] %v445_v7 }
 0x1ed   :  { %450 = vst [vmem:[%s698_s5 + $0x18] sm:$0xff] %v446_v9 }
 0x1ee   :  { %455 = vsyncpa [#allocation4], 1 }
 0x1ef   :  { %456 = vsyncpa [#allocation6], 1 }

</bundles_post_ra>
